<compile_context>
chip_gen: v5e
topology: v5e:2x2
jax: 0.10.0
libtpu: 0.0.40
codegen_flags: <defaults>
</compile_context>

<pallas_src>
import functools

import jax
import jax.numpy as jnp
from jax.experimental import pallas as pl
from jax.experimental.pallas import tpu as pltpu


def _dice_sums_kernel(pred_ref, tgt_ref, out_i_ref, out_p_ref, out_t_ref,
                      *, hw, needs_mask):
    bt = pl.program_id(1)                       # pixel-row tile index

    @pl.when(bt == 0)
    def _():                                    # per-batch accumulator init
        out_i_ref[...] = jnp.zeros_like(out_i_ref)
        out_p_ref[...] = jnp.zeros_like(out_p_ref)
        out_t_ref[...] = jnp.zeros_like(out_t_ref)

    x = pred_ref[...].astype(jnp.float32)       # (C, TS, 128) logits; pixels on (sub)lanes
    y = tgt_ref[...].astype(jnp.float32)        # (C, TS, 128) multilabel targets
    c, ts, _ = x.shape
    acc_rows = out_i_ref.shape[1]
    fold = ts // acc_rows

    # Softmax over the class axis: C is a leading (major) axis, so the max / sum /
    # scale are plain elementwise VPU ops over full (8,128) vregs.
    m = jnp.max(x, axis=0, keepdims=True)       # (1, TS, 128)
    e = jnp.exp(x - m)
    s = jnp.sum(e, axis=0, keepdims=True)
    p = e * pl.reciprocal(s, approx=False)      # EUP reciprocal instead of a divide

    def _fold_rows(v):
        # (C, TS, 128) -> (C, ACC_ROWS, 128): sum sublane-row groups of 8 with
        # tile-aligned static slices (pure vreg adds, no XLU, no reshape relayout).
        acc = v[:, 0:acc_rows]
        for f in range(1, fold):
            acc = acc + v[:, f * acc_rows:(f + 1) * acc_rows]
        return acc

    def _accumulate(pp, yy):
        out_i_ref[...] += _fold_rows(pp * yy)
        out_p_ref[...] += _fold_rows(pp)
        out_t_ref[...] += _fold_rows(yy)

    if needs_mask:
        last = pl.num_programs(1) - 1

        @pl.when(bt != last)
        def _():
            _accumulate(p, y)                   # no per-step mask cost on full tiles

        @pl.when(bt == last)
        def _():
            # Mask padded / out-of-bounds pixels only on the last tile.  Keep the
            # mask as a select (where), not a multiply, so garbage lanes (stale VMEM
            # from the clipped edge DMA) cannot poison the accumulators.
            row = jax.lax.broadcasted_iota(jnp.int32, (1, ts, 128), 1)
            lane = jax.lax.broadcasted_iota(jnp.int32, (1, ts, 128), 2)
            pix = (bt * ts + row) * 128 + lane
            valid = pix < hw
            _accumulate(jnp.where(valid, p, 0.0), jnp.where(valid, y, 0.0))
    else:
        _accumulate(p, y)


def dice_coef_multilabel_loss(predict, target, num_labels=2,
                              channel='channel_first', *, max_tile_px=262144):
    """predict: (n, c, h, w) logits; target: (n, c, h, w) multilabel (0/1) values."""
    assert channel in ('channel_first', 'channel_last'), \
        "channel has to be either 'channel_first' or 'channel_last'"
    if channel != 'channel_first':
        # TODO(synk): channel='channel_last' branch (Softmax2d still normalizes dim 1
        # of the NHWC tensor in the original module) has no clean lane-dense mapping.
        raise NotImplementedError("channel_last not implemented in the Pallas path")

    n, c, h, w = predict.shape
    assert target.shape == predict.shape
    assert 1 <= num_labels <= c
    hw = h * w

    rows = pl.cdiv(hw, 128)
    hw_pad = rows * 128
    pred3 = predict.reshape(n, c, hw)
    tgt3 = target.reshape(n, c, hw)
    if hw_pad != hw:
        # One-time pad (HBM copy) only when H*W is not a multiple of 128; the padded
        # pixels are masked inside the kernel on the last tile.
        pad = ((0, 0), (0, 0), (0, hw_pad - hw))
        pred3 = jnp.pad(pred3, pad)
        tgt3 = jnp.pad(tgt3, pad)
    pred4 = pred3.reshape(n, c, rows, 128)      # pure reshape: pixels -> (sublane, lane)
    tgt4 = tgt3.reshape(n, c, rows, 128)

    # Pixel-row tile size: big enough that each grid step streams several MiB of HBM
    # (amortizes the ~0.35us/step pipeline overhead), capped so one (C, TS, 128) f32
    # input block stays <= ~4 MiB (2 inputs x 2 pipeline buffers ~= 16 MiB VMEM,
    # comfortably under the 32 MiB scoped limit we request, and under v7x's 64 MiB).
    budget_rows = (4 * 1024 * 1024) // (c * 128 * 4)
    px_rows = max(1, max_tile_px // 128)
    cap_rows = max(8, (min(budget_rows, px_rows) // 8) * 8)
    ts = rows if rows <= cap_rows else cap_rows
    num_t = pl.cdiv(rows, ts)
    needs_mask = (num_t * ts * 128 != hw)

    # Fixed small accumulator width: fold each step's (C, TS, 128) contribution down
    # to (C, ACC_ROWS, 128) so accumulator RMW is a few vregs per step.
    acc_rows = 8 if ts % 8 == 0 else ts

    kernel = functools.partial(_dice_sums_kernel, hw=hw, needs_mask=needs_mask)
    out_shape = tuple(jax.ShapeDtypeStruct((n, c, acc_rows, 128), jnp.float32)
                      for _ in range(3))

    out_i, out_p, out_t = pl.pallas_call(
        kernel,
        out_shape=out_shape,
        grid_spec=pltpu.PrefetchScalarGridSpec(
            num_scalar_prefetch=0,
            grid=(n, num_t),
            in_specs=[
                pl.BlockSpec((None, c, ts, 128), lambda bn, bt: (bn, 0, bt, 0)),
                pl.BlockSpec((None, c, ts, 128), lambda bn, bt: (bn, 0, bt, 0)),
            ],
            out_specs=[
                pl.BlockSpec((None, c, acc_rows, 128), lambda bn, bt: (bn, 0, 0, 0)),
                pl.BlockSpec((None, c, acc_rows, 128), lambda bn, bt: (bn, 0, 0, 0)),
                pl.BlockSpec((None, c, acc_rows, 128), lambda bn, bt: (bn, 0, 0, 0)),
            ],
        ),
        compiler_params=pltpu.CompilerParams(
            dimension_semantics=("parallel", "arbitrary"),
            vmem_limit_bytes=32 * 1024 * 1024),
    )(pred4, tgt4)

    # Tiny final reduction + Dice arithmetic (plain XLA, negligible).
    inter = jnp.sum(out_i, axis=(0, 2, 3))[:num_labels]
    psum = jnp.sum(out_p, axis=(0, 2, 3))[:num_labels]
    tsum = jnp.sum(out_t, axis=(0, 2, 3))[:num_labels]

    # dice_loss per label: 1 - (2*intersection + 1) / (sum(p) + sum(t) + 1); mean.
    score = (2.0 * inter + 1.0) / (psum + tsum + 1.0)
    return jnp.sum(1.0 - score) / num_labels


def _reference(predict, target, num_labels, channel='channel_first'):
    p = jax.nn.softmax(predict.astype(jnp.float32), axis=1)
    t = target.astype(jnp.float32)
    dice = 0.0
    for idx in range(num_labels):
        pi = p[:, idx, :, :].reshape(-1)
        ti = t[:, idx, :, :].reshape(-1)
        inter = jnp.sum(pi * ti)
        score = (2.0 * inter + 1.0) / (jnp.sum(pi) + jnp.sum(ti) + 1.0)
        dice = dice + (1.0 - score)
    return dice / num_labels


if __name__ == "__main__":
    key = jax.random.PRNGKey(0)
    k1, k2, k3, k4 = jax.random.split(key, 4)

    # main case: batch=2, channels=4, 16x16 spatial, dice over all 4 labels
    n, c, h, w = 2, 4, 16, 16
    predict = jax.random.normal(k1, (n, c, h, w), dtype=jnp.float32)
    labels = jax.random.randint(k2, (n, h, w), 0, c, dtype=jnp.int32)
    target = jax.nn.one_hot(labels, c, axis=1, dtype=jnp.float32)   # (n, c, h, w)

    loss = dice_coef_multilabel_loss(predict, target, num_labels=c,
                                     channel='channel_first')
    loss = jax.block_until_ready(loss)
    ref = _reference(predict, target, num_labels=c)
    assert jnp.allclose(loss, ref, rtol=1e-5, atol=1e-5), (loss, ref)

    # default numLabels=2 path (softmax over all 4 channels, Dice over first 2)
    loss2 = dice_coef_multilabel_loss(predict, target, num_labels=2)
    ref2 = _reference(predict, target, num_labels=2)
    assert jnp.allclose(jax.block_until_ready(loss2), ref2, rtol=1e-5, atol=1e-5), (loss2, ref2)

    # ragged path: hw not a multiple of 128 AND more rows than the forced tile, so the
    # multi-tile + last-tile-mask branch is exercised (33*35 = 1155 px, 10 rows, ts=8).
    n2, c2, h2, w2 = 2, 3, 33, 35
    predict_r = jax.random.normal(k3, (n2, c2, h2, w2), dtype=jnp.float32)
    labels_r = jax.random.randint(k4, (n2, h2, w2), 0, c2, dtype=jnp.int32)
    target_r = jax.nn.one_hot(labels_r, c2, axis=1, dtype=jnp.float32)
    loss3 = dice_coef_multilabel_loss(predict_r, target_r, num_labels=c2,
                                      max_tile_px=1024)
    ref3 = _reference(predict_r, target_r, num_labels=c2)
    assert jnp.allclose(jax.block_until_ready(loss3), ref3, rtol=1e-5, atol=1e-5), (loss3, ref3)

    print("KERNEL_OK")
</pallas_src>

<mosaic_0001>
module attributes {stable_mosaic.version = 11 : i64} {
  func.func @_dice_sums_kernel(%arg0: i32, %arg1: i32, %arg2: memref<1x4x2x128xf32, #tpu.memory_space<vmem>>, %arg3: memref<1x4x2x128xf32, #tpu.memory_space<vmem>>, %arg4: memref<1x4x2x128xf32, #tpu.memory_space<vmem>>, %arg5: memref<1x4x2x128xf32, #tpu.memory_space<vmem>>, %arg6: memref<1x4x2x128xf32, #tpu.memory_space<vmem>>) attributes {dimension_semantics = [#tpu.dimension_semantics<parallel>, #tpu.dimension_semantics<arbitrary>], iteration_bounds = array<i64: 2, 1>, scalar_prefetch = 0 : i64, scratch_operands = 0 : i64, tpu.core_type = #tpu.core_type<tc>, window_params = [{transform_indices = @transform_0, window_bounds = array<i64: 1, 4, 2, 128>}, {transform_indices = @transform_1, window_bounds = array<i64: 1, 4, 2, 128>}, {transform_indices = @transform_2, window_bounds = array<i64: 1, 4, 2, 128>}, {transform_indices = @transform_3, window_bounds = array<i64: 1, 4, 2, 128>}, {transform_indices = @transform_4, window_bounds = array<i64: 1, 4, 2, 128>}]} {
    %c0_i32 = arith.constant 0 : i32
    %0 = arith.cmpi eq, %arg1, %c0_i32 : i32
    %1 = arith.extui %0 : i1 to i32
    %c0_i32_0 = arith.constant 0 : i32
    %2 = arith.cmpi ne, %1, %c0_i32_0 : i32
    scf.if %2 {
      %cst_33 = arith.constant 0.000000e+00 : f32
      %36 = vector.broadcast %cst_33 : f32 to vector<4x2x128xf32>
      %c0_34 = arith.constant 0 : index
      %c0_35 = arith.constant 0 : index
      %c0_36 = arith.constant 0 : index
      %c0_37 = arith.constant 0 : index
      %37 = vector.load %arg4[%c0_34, %c0_35, %c0_36, %c0_37] : memref<1x4x2x128xf32, #tpu.memory_space<vmem>>, vector<1x4x2x128xf32>
      %38 = vector.shape_cast %37 : vector<1x4x2x128xf32> to vector<4x2x128xf32>
      %39 = vector.shape_cast %36 : vector<4x2x128xf32> to vector<1x4x2x128xf32>
      tpu.vector_store %arg4[%c0_34, %c0_35, %c0_36, %c0_37], %39 {strides = array<i32>} : memref<1x4x2x128xf32, #tpu.memory_space<vmem>>, vector<1x4x2x128xf32>,
      %cst_38 = arith.constant 0.000000e+00 : f32
      %40 = vector.broadcast %cst_38 : f32 to vector<4x2x128xf32>
      %c0_39 = arith.constant 0 : index
      %c0_40 = arith.constant 0 : index
      %c0_41 = arith.constant 0 : index
      %c0_42 = arith.constant 0 : index
      %41 = vector.load %arg5[%c0_39, %c0_40, %c0_41, %c0_42] : memref<1x4x2x128xf32, #tpu.memory_space<vmem>>, vector<1x4x2x128xf32>
      %42 = vector.shape_cast %41 : vector<1x4x2x128xf32> to vector<4x2x128xf32>
      %43 = vector.shape_cast %40 : vector<4x2x128xf32> to vector<1x4x2x128xf32>
      tpu.vector_store %arg5[%c0_39, %c0_40, %c0_41, %c0_42], %43 {strides = array<i32>} : memref<1x4x2x128xf32, #tpu.memory_space<vmem>>, vector<1x4x2x128xf32>,
      %cst_43 = arith.constant 0.000000e+00 : f32
      %44 = vector.broadcast %cst_43 : f32 to vector<4x2x128xf32>
      %c0_44 = arith.constant 0 : index
      %c0_45 = arith.constant 0 : index
      %c0_46 = arith.constant 0 : index
      %c0_47 = arith.constant 0 : index
      %45 = vector.load %arg6[%c0_44, %c0_45, %c0_46, %c0_47] : memref<1x4x2x128xf32, #tpu.memory_space<vmem>>, vector<1x4x2x128xf32>
      %46 = vector.shape_cast %45 : vector<1x4x2x128xf32> to vector<4x2x128xf32>
      %47 = vector.shape_cast %44 : vector<4x2x128xf32> to vector<1x4x2x128xf32>
      tpu.vector_store %arg6[%c0_44, %c0_45, %c0_46, %c0_47], %47 {strides = array<i32>} : memref<1x4x2x128xf32, #tpu.memory_space<vmem>>, vector<1x4x2x128xf32>,
    } else {
    }
    %c0 = arith.constant 0 : index
    %c0_1 = arith.constant 0 : index
    %c0_2 = arith.constant 0 : index
    %c0_3 = arith.constant 0 : index
    %3 = vector.load %arg2[%c0, %c0_1, %c0_2, %c0_3] : memref<1x4x2x128xf32, #tpu.memory_space<vmem>>, vector<1x4x2x128xf32>
    %4 = vector.shape_cast %3 : vector<1x4x2x128xf32> to vector<4x2x128xf32>
    %c0_4 = arith.constant 0 : index
    %c0_5 = arith.constant 0 : index
    %c0_6 = arith.constant 0 : index
    %c0_7 = arith.constant 0 : index
    %5 = vector.load %arg3[%c0_4, %c0_5, %c0_6, %c0_7] : memref<1x4x2x128xf32, #tpu.memory_space<vmem>>, vector<1x4x2x128xf32>
    %6 = vector.shape_cast %5 : vector<1x4x2x128xf32> to vector<4x2x128xf32>
    %cst = arith.constant dense<0xFF800000> : vector<2x128xf32>
    %7 = vector.multi_reduction <maximumf>, %4, %cst [0] : vector<4x2x128xf32> to vector<2x128xf32>
    %8 = vector.shape_cast %7 : vector<2x128xf32> to vector<1x2x128xf32>
    %9 = vector.broadcast %8 : vector<1x2x128xf32> to vector<4x2x128xf32>
    %10 = arith.subf %4, %9 : vector<4x2x128xf32>
    %11 = math.exp %10 : vector<4x2x128xf32>
    %cst_8 = arith.constant dense<0.000000e+00> : vector<2x128xf32>
    %12 = vector.multi_reduction <add>, %11, %cst_8 [0] : vector<4x2x128xf32> to vector<2x128xf32>
    %13 = vector.shape_cast %12 : vector<2x128xf32> to vector<1x2x128xf32>
    %14 = tpu.reciprocal %13 : vector<1x2x128xf32> -> vector<1x2x128xf32>
    %15 = vector.broadcast %14 : vector<1x2x128xf32> to vector<4x2x128xf32>
    %16 = arith.mulf %11, %15 : vector<4x2x128xf32>
    %c0_9 = arith.constant 0 : index
    %c0_10 = arith.constant 0 : index
    %c0_11 = arith.constant 0 : index
    %c0_12 = arith.constant 0 : index
    %17 = vector.load %arg4[%c0_9, %c0_10, %c0_11, %c0_12] : memref<1x4x2x128xf32, #tpu.memory_space<vmem>>, vector<1x4x2x128xf32>
    %18 = vector.shape_cast %17 : vector<1x4x2x128xf32> to vector<4x2x128xf32>
    %19 = arith.mulf %16, %6 : vector<4x2x128xf32>
    %20 = arith.addf %18, %19 : vector<4x2x128xf32>
    %c0_13 = arith.constant 0 : index
    %c0_14 = arith.constant 0 : index
    %c0_15 = arith.constant 0 : index
    %c0_16 = arith.constant 0 : index
    %21 = vector.load %arg4[%c0_13, %c0_14, %c0_15, %c0_16] : memref<1x4x2x128xf32, #tpu.memory_space<vmem>>, vector<1x4x2x128xf32>
    %22 = vector.shape_cast %21 : vector<1x4x2x128xf32> to vector<4x2x128xf32>
    %23 = vector.shape_cast %20 : vector<4x2x128xf32> to vector<1x4x2x128xf32>
    tpu.vector_store %arg4[%c0_13, %c0_14, %c0_15, %c0_16], %23 {strides = array<i32>} : memref<1x4x2x128xf32, #tpu.memory_space<vmem>>, vector<1x4x2x128xf32>,
    %c0_17 = arith.constant 0 : index
    %c0_18 = arith.constant 0 : index
    %c0_19 = arith.constant 0 : index
    %c0_20 = arith.constant 0 : index
    %24 = vector.load %arg5[%c0_17, %c0_18, %c0_19, %c0_20] : memref<1x4x2x128xf32, #tpu.memory_space<vmem>>, vector<1x4x2x128xf32>
    %25 = vector.shape_cast %24 : vector<1x4x2x128xf32> to vector<4x2x128xf32>
    %26 = arith.addf %25, %16 : vector<4x2x128xf32>
    %c0_21 = arith.constant 0 : index
    %c0_22 = arith.constant 0 : index
    %c0_23 = arith.constant 0 : index
    %c0_24 = arith.constant 0 : index
    %27 = vector.load %arg5[%c0_21, %c0_22, %c0_23, %c0_24] : memref<1x4x2x128xf32, #tpu.memory_space<vmem>>, vector<1x4x2x128xf32>
    %28 = vector.shape_cast %27 : vector<1x4x2x128xf32> to vector<4x2x128xf32>
    %29 = vector.shape_cast %26 : vector<4x2x128xf32> to vector<1x4x2x128xf32>
    tpu.vector_store %arg5[%c0_21, %c0_22, %c0_23, %c0_24], %29 {strides = array<i32>} : memref<1x4x2x128xf32, #tpu.memory_space<vmem>>, vector<1x4x2x128xf32>,
    %c0_25 = arith.constant 0 : index
    %c0_26 = arith.constant 0 : index
    %c0_27 = arith.constant 0 : index
    %c0_28 = arith.constant 0 : index
    %30 = vector.load %arg6[%c0_25, %c0_26, %c0_27, %c0_28] : memref<1x4x2x128xf32, #tpu.memory_space<vmem>>, vector<1x4x2x128xf32>
    %31 = vector.shape_cast %30 : vector<1x4x2x128xf32> to vector<4x2x128xf32>
    %32 = arith.addf %31, %6 : vector<4x2x128xf32>
    %c0_29 = arith.constant 0 : index
    %c0_30 = arith.constant 0 : index
    %c0_31 = arith.constant 0 : index
    %c0_32 = arith.constant 0 : index
    %33 = vector.load %arg6[%c0_29, %c0_30, %c0_31, %c0_32] : memref<1x4x2x128xf32, #tpu.memory_space<vmem>>, vector<1x4x2x128xf32>
    %34 = vector.shape_cast %33 : vector<1x4x2x128xf32> to vector<4x2x128xf32>
    %35 = vector.shape_cast %32 : vector<4x2x128xf32> to vector<1x4x2x128xf32>
    tpu.vector_store %arg6[%c0_29, %c0_30, %c0_31, %c0_32], %35 {strides = array<i32>} : memref<1x4x2x128xf32, #tpu.memory_space<vmem>>, vector<1x4x2x128xf32>,
    return
  }
  func.func @transform_0(%arg0: i32, %arg1: i32) -> (i32, i32, i32, i32) {
    %c0_i32 = arith.constant 0 : i32
    %c0_i32_0 = arith.constant 0 : i32
    %c0_i32_1 = arith.constant 0 : i32
    return %arg0, %c0_i32, %arg1, %c0_i32_0 : i32, i32, i32, i32
  }
  func.func @transform_1(%arg0: i32, %arg1: i32) -> (i32, i32, i32, i32) {
    %c0_i32 = arith.constant 0 : i32
    %c0_i32_0 = arith.constant 0 : i32
    %c0_i32_1 = arith.constant 0 : i32
    return %arg0, %c0_i32, %arg1, %c0_i32_0 : i32, i32, i32, i32
  }
  func.func @transform_2(%arg0: i32, %arg1: i32) -> (i32, i32, i32, i32) {
    %c0_i32 = arith.constant 0 : i32
    %c0_i32_0 = arith.constant 0 : i32
    %c0_i32_1 = arith.constant 0 : i32
    %c0_i32_2 = arith.constant 0 : i32
    return %arg0, %c0_i32, %c0_i32_0, %c0_i32_1 : i32, i32, i32, i32
  }
  func.func @transform_3(%arg0: i32, %arg1: i32) -> (i32, i32, i32, i32) {
    %c0_i32 = arith.constant 0 : i32
    %c0_i32_0 = arith.constant 0 : i32
    %c0_i32_1 = arith.constant 0 : i32
    %c0_i32_2 = arith.constant 0 : i32
    return %arg0, %c0_i32, %c0_i32_0, %c0_i32_1 : i32, i32, i32, i32
  }
  func.func @transform_4(%arg0: i32, %arg1: i32) -> (i32, i32, i32, i32) {
    %c0_i32 = arith.constant 0 : i32
    %c0_i32_0 = arith.constant 0 : i32
    %c0_i32_1 = arith.constant 0 : i32
    %c0_i32_2 = arith.constant 0 : i32
    return %arg0, %c0_i32, %c0_i32_0, %c0_i32_1 : i32, i32, i32, i32
  }
}

</mosaic_0001>

<bundles_post_ra>
// kernel: tpu_custom_call.1
= control target key start
LH: loop header
LB: loop body
LE: loop exit
PB: predicated region body
PF: predicated region fallthrough
CT: control target
= control target key end

     0   :  { %s1279_s0 = inlined_call_operand.hbm [shape: f32[2,4,2,128], index: 0, kind: input, shape index: {}]   ;;  %s1280_s1 = inlined_call_operand.hbm [shape: f32[2,4,2,128], index: 1, kind: input, shape index: {}]   ;;  %s1281_s2 = inlined_call_operand.hbm [shape: f32[2,4,2,128], index: 2, kind: output, shape index: {0}]   ;;  %s1282_s3 = inlined_call_operand.hbm [shape: f32[2,4,2,128], index: 3, kind: output, shape index: {1}]   ;;  %s1283_s4 = inlined_call_operand.hbm [shape: f32[2,4,2,128], index: 4, kind: output, shape index: {2}]  }
   0x1   :  { %1287 = sst [smem:[#allocation17_spill]] %s1279_s0 }
   0x2   :  { %10 = vsyncpa [#allocation3], 0 }
   0x3   :  { %12 = vsyncpa [#allocation3 + $0x1], 0 }
   0x4   :  { %13 = vsyncpa [#allocation6], 0 }
   0x5   :  { %15 = vsyncpa [#allocation6 + $0x1], 0 }
   0x6   :  { %16 = vsyncpa [#allocation4], 0 }
   0x7   :  { %18 = vsyncpa [#allocation4 + $0x1], 0 }
   0x8   :  { %19 = vsyncpa [#allocation9], 0 }
   0x9   :  { %21 = vsyncpa [#allocation9 + $0x1], 0  ;;  %s998_s15 = smov 0   ;;  %s1000_s16 = smov 0  }
   0xa   :  { %s1002_s17 = smov 0   ;;  %s1004_s18 = smov 0  }
   0xb   :  { %s1006_s19 = smov 0   ;;  %s1008_s20 = smov 0  }
   0xc LB: > { %1288 = sst [smem:[#allocation15_spill]] %s962_s19  ;;  %s1029_s21 = sadd.s32 4294967295, %s966_s20   ;;  %s966_s20 = sphi %s1008_s20, %s27_s20   ;;  %s962_s19 = sphi %s1006_s19, %s1298_s19   ;;  %s958_s18 = sphi %s1004_s18, %s1297_s18   ;;  %s954_s17 = sphi %s1002_s17, %s1301_s17   ;;  %s950_s16 = sphi %s1000_s16, %s1300_s16   ;;  %s946_s15 = sphi %s998_s15, %s1299_s15  }
   0xd   : > { %s1284_s22 = sadd.s32 4294967294, %s966_s20   ;;  %s39_s23 = sadd.s32 1, %s962_s19 }
   0xe   : > { %s48_s24 = sadd.s32 1, %s954_s17  ;;  %p41_p0 = scmp.ge.s32.totalorder %s39_s23, 2 }
   0xf   : > { %p55_p1 = scmp.ne.s32.totalorder %s954_s17, %s950_s16  ;;  %p56_p2 = scmp.eq.s32.totalorder %s966_s20, 0 }
  0x10   : > { %p61_p3 = scmp.ne.s32.totalorder %s950_s16, %s946_s15  ;;  %s1303_s23 = smov (%p41_p0, %s39_s23), 0 }
  0x11   : > { %1289 = sst [smem:[#allocation16_spill]] %s1303_s23  ;;  %p1041_p4 = por %p56_p2, %p55_p1 }
  0x12   : > { %p62_p5 = scmp.eq.s32.totalorder %s1029_s21, 0  ;;  %s43_s26 = ssub.s32 %s962_s19, %s1303_s23 }
  0x13   : > { %p113_p6 = scmp.eq.s32.totalorder %s1029_s21, 1  ;;  %p46_p7 = scmp.eq.s32.totalorder %s43_s26, 0 }
  0x14   : > { %p1049_p8 = por %p62_p5, %p61_p3  ;;  %p119_p10 = scmp.eq.s32.totalorder %s1284_s22, 1 }
  0x15   : > { %p1053_p9 = por %p113_p6, %p55_p1  ;;  %p639_p12 = scmp.ge.s32.totalorder %s966_s20, 2 }
  0x16   : > { %s1060_s29 = scalar_select %p46_p7, %s954_s17, %s48_s24  }
  0x17   : > { %p1062_p11 = por %p119_p10, %p61_p3  ;;  %p695_p13 = scmp.lt.s32.totalorder %s966_s20, 2 }
  0x18   : > { %s1069_s5 = sand.u32 1, %s954_s17   ;;  %s663_s7 = sshll.u32 %s962_s19, 3 }
  0x19   : > { %s640_s6 = sshll.u32 %s1069_s5, 3  ;;  %s1294_s0 = sld [smem:[#allocation17_spill]] }
  0x1a   : > { %s195_s11 = scalar_lea.vmem [#allocation2], %s640_s6  ;;  %p1078_p0 = pnand %p695_p13, %p1041_p4 }
  0x1b   : > { %s204_s12 = sshll.u32 %s195_s11, 4  ;;  %p646_p1 = scmp.ge.s32.totalorder %s966_s20, 1  ;;  %s205_s12 = int_to_ptr.vmem [resolvable:$true] %s204_s12 }
  0x1c   : > { %s192_s24 = scalar_lea.sflag [#allocation3], %s1069_s5  ;;  %s968_s26 = smov 32  }
  0x1d   : > { %s969_s22 = smov 2   ;;  %p235_p2 = scmp.lt.s32.totalorder %s966_s20, 3 }
  0x1e   : > { %s218_s25 = scalar_lea.vmem [#allocation5], %s640_s6  ;;  %s215_s23 = scalar_lea.sflag [#allocation6], %s1069_s5 }
  0x1f   : > { %s201_s10 = scalar_lea.hbm %s1294_s0, %s663_s7  ;;  %p236_p3 = pnand %p646_p1, %p235_p2 }
  0x20   : > { %s202_s13 = sshll.u32 %s201_s10, 4  ;;  %s224_s10 = scalar_lea.hbm %s1280_s1, %s663_s7  ;;  %s203_s13 = int_to_ptr.hbm [resolvable:$true] %s202_s13 }
  0x21   : > { %681 = dma.hbm_to_vmem [thread:$0]  (!%p1078_p0), %s203_s13, 128, %s205_s12, %s192_s24, %s968_s26, %s968_s26, %s969_s22  }
  0x22   : > { %s225_s11 = sshll.u32 %s224_s10, 4  ;;  %s227_s0 = sshll.u32 %s218_s25, 4  ;;  %s226_s11 = int_to_ptr.hbm [resolvable:$true] %s225_s11  ;;  %s228_s0 = int_to_ptr.vmem [resolvable:$true] %s227_s0 }
  0x23   : > { %684 = dma.hbm_to_vmem [thread:$0]  (!%p1078_p0), %s226_s11, 128, %s228_s0, %s215_s23, %s968_s26, %s968_s26, %s969_s22  }
  0x24   : > { %239 = sbr.rel (%p236_p3) target bundleno = 127 (0x7f), region = 28  ;;  %s1094_s19 = sand.u32 (!%p236_p3), 1, %s950_s16  }
  0x25   : > { %s647_s12 = sshll.u32 (!%p236_p3), %s1094_s19, 3  ;;  %s242_s13 = scalar_lea.sflag (!%p236_p3), [#allocation3], %s1094_s19 }
  0x26   : > { %s245_s24 = scalar_lea.vmem (!%p236_p3), [#allocation2], %s647_s12 }
  0x29   : > { %929 = dma.done.wait (%p1049_p8), %s242_s13, 128  }
  0x2a   : > { %931 = vsyncadd (%p1049_p8), %s242_s13, 4294967168  ;;  %s252_s5 = scalar_lea.sflag [#allocation6], %s1094_s19  ;;  %s1103_s6 = scalar_lea.vmem [#allocation5], %s647_s12 }
  0x2b   : > { %933 = dma.done.wait (%p1049_p8), %s252_s5, 128  }
  0x2c   : > { %935 = vsyncadd (%p1049_p8), %s252_s5, 4294967168  ;;  %s1109_s0 = scalar_lea.vmem [#allocation8], %s647_s12  ;;  %v970_v0 = vmov 0.0   ;;  %s1115_s22 = scalar_lea.vmem [#allocation7], %s647_s12  ;;  %vm320_vm0 = vcmask 1041408  }
  0x2d   : > { %304 = vst [vmem:[%s1109_s0] sm:$0x3] %v970_v0  ;;  %v312_v1 = vld [vmem:[%s245_s24] sm:$0x3]  ;;  %v313_v2 = vld [vmem:[%s245_s24 + $0x2] sm:$0x3]  ;;  %s1121_s23 = scalar_lea.vmem [#allocation10], %s647_s12 }
  0x2e   : > { %305 = vst [vmem:[%s1109_s0 + $0x2] sm:$0x3] %v970_v0  ;;  %v314_v3 = vld [vmem:[%s245_s24 + $0x4] sm:$0x3]  ;;  %v315_v4 = vld [vmem:[%s245_s24 + $0x6] sm:$0x3] }
  0x2f   : > { %306 = vst [vmem:[%s1109_s0 + $0x4] sm:$0x3] %v970_v0  ;;  %v321_v5 = vsel %vm320_vm0, %v312_v1, -inf  ;;  %v322_v6 = vsel %vm320_vm0, %v313_v2, -inf  ;;  %v323_v7 = vsel %vm320_vm0, %v314_v3, -inf  ;;  %v324_v8 = vsel %vm320_vm0, %v315_v4, -inf }
  0x30   : > { %307 = vst [vmem:[%s1109_s0 + $0x6] sm:$0x3] %v970_v0  ;;  %v325_v9 = vmax.f32 %v321_v5, %v322_v6  ;;  %v326_v10 = vmax.f32 %v323_v7, %v324_v8  ;;  %v316_v21 = vld [vmem:[%s1103_s6] sm:$0x3]  ;;  %v317_v22 = vld [vmem:[%s1103_s6 + $0x2] sm:$0x3] }
  0x31   : > { %300 = vst [vmem:[%s1115_s22] sm:$0x3] %v970_v0  ;;  %v318_v25 = vld [vmem:[%s1103_s6 + $0x4] sm:$0x3]  ;;  %v319_v26 = vld [vmem:[%s1103_s6 + $0x6] sm:$0x3]  ;;  %s410_s27 = sand.u32 1, %s1029_s21  }
  0x32   : > { %301 = vst [vmem:[%s1115_s22 + $0x2] sm:$0x3] %v970_v0  ;;  %v327_v11 = vmax.f32 %v325_v9, %v326_v10  ;;  %s1153_s7 = sshll.u32 %s958_s18, 3  ;;  %s445_s8 = sshll.u32 %s1109_s0, 4  ;;  %s1175_s8 = int_to_ptr.vmem [resolvable:$true] %s445_s8 }
  0x33   : > { %302 = vst [vmem:[%s1115_s22 + $0x4] sm:$0x3] %v970_v0  ;;  %s444_s26 = scalar_lea.hbm %s1282_s3, %s1153_s7  ;;  %s427_s11 = scalar_lea.hbm %s1281_s2, %s1153_s7 }
  0x34   : > { %303 = vst [vmem:[%s1115_s22 + $0x6] sm:$0x3] %v970_v0  ;;  %v328_v12 = vsub.f32 %v312_v1, %v327_v11  ;;  %v329_v13 = vsub.f32 %v313_v2, %v327_v11  ;;  %v330_v14 = vsub.f32 %v314_v3, %v327_v11  ;;  %v331_v15 = vsub.f32 %v315_v4, %v327_v11  ;;  %v381_v52 = vld [vmem:[%s1109_s0] sm:$0x3]  ;;  %s461_s13 = scalar_lea.hbm %s1283_s4, %s1153_s7  ;;  %s1177_s24 = sshll.u32 %s444_s26, 4  ;;  %s448_s24 = int_to_ptr.hbm [resolvable:$true] %s1177_s24 }
  0x35   : > { %308 = vst [vmem:[%s1121_s23] sm:$0x3] %v970_v0  ;;  %v382_v54 = vld [vmem:[%s1109_s0 + $0x2] sm:$0x3]  ;;  %s428_s5 = sshll.u32 %s1115_s22, 4  ;;  %s1181_s6 = sshll.u32 %s427_s11, 4  ;;  %s1190_s5 = int_to_ptr.vmem [resolvable:$true] %s428_s5  ;;  %s431_s6 = int_to_ptr.hbm [resolvable:$true] %s1181_s6 }
  0x36   : > { %309 = vst [vmem:[%s1121_s23 + $0x2] sm:$0x3] %v970_v0  ;;  %v332_v16 = vmul.f32 1.442695, %v328_v12  ;;  %v334_v17 = vmul.f32 1.442695, %v329_v13 }
  0x37   : > { %310 = vst [vmem:[%s1121_s23 + $0x4] sm:$0x3] %v970_v0  ;;  %v336_v18 = vmul.f32 1.442695, %v330_v14  ;;  %v338_v19 = vmul.f32 1.442695, %v331_v15 }
  0x38   : > { %311 = vst [vmem:[%s1121_s23 + $0x6] sm:$0x3] %v970_v0  ;;  %750 = vpow2.f32 %v332_v16  ;;  %v383_v55 = vld [vmem:[%s1109_s0 + $0x4] sm:$0x3]  ;;  %v384_v56 = vld [vmem:[%s1109_s0 + $0x6] sm:$0x3] }
  0x39   : > { %752 = vpow2.f32 %v334_v17  ;;  %v365_v1 = vld [vmem:[%s1115_s22] sm:$0x3]  ;;  %v366_v2 = vld [vmem:[%s1115_s22 + $0x2] sm:$0x3]  ;;  %s1184_s14 = sshll.u32 %s461_s13, 4  ;;  %s462_s7 = sshll.u32 %s1121_s23, 4  ;;  %s1194_s7 = int_to_ptr.vmem [resolvable:$true] %s462_s7  ;;  %s465_s14 = int_to_ptr.hbm [resolvable:$true] %s1184_s14 }
  0x3a   : > { %754 = vpow2.f32 %v336_v18  ;;  %v367_v5 = vld [vmem:[%s1115_s22 + $0x4] sm:$0x3]  ;;  %s834_s18 = sshra.s32 %s448_s24, 4  ;;  %s840_s10 = scalar_lea.hbm %s1282_s3, 16  ;;  %s835_s18 = int_to_ptr.hbm [resolvable:$true] %s834_s18 }
  0x3b   : > { %756 = vpow2.f32 %v338_v19  ;;  %v368_v8 = vld [vmem:[%s1115_s22 + $0x6] sm:$0x3]  ;;  %s836_s26 = scalar_lea.hbm %s835_s18, 8  ;;  %p841_p7 = scmp.lt.s32.totalorder %s835_s18, %s1282_s3 }
  0x3c   : > { %v393_v29 = vld [vmem:[%s1121_s23] sm:$0x3]  ;;  %p837_p4 = scmp.ne.s32.totalorder %s835_s18, %s836_s26  ;;  %p842_p8 = scmp.lt.s32.totalorder %s840_s10, %s836_s26 }
  0x3d   : > { %v394_v30 = vld [vmem:[%s1121_s23 + $0x2] sm:$0x3]  ;;  %v397_v34 = vadd.f32 %v393_v29, %v316_v21 }
  0x3e   : > { %v751_v20 = vpop.eup %750  ;;  %v398_v35 = vadd.f32 %v394_v30, %v317_v22  ;;  %v395_v36 = vld [vmem:[%s1121_s23 + $0x4] sm:$0x3]  ;;  %p838_p5 = pnand %p837_p4, %p1053_p9  ;;  %p843_p10 = por %p842_p8, %p841_p7 }
  0x3f   : > { %v753_v23 = vpop.eup %752  ;;  %v340_v24 = vsel %vm320_vm0, %v751_v20, 0.0  ;;  %v396_v37 = vld [vmem:[%s1121_s23 + $0x6] sm:$0x3]  ;;  %v399_v39 = vadd.f32 %v395_v36, %v318_v25  ;;  %401 = vst [vmem:[%s1121_s23] sm:$0x3] %v397_v34 }
  0x40   : > { %v755_v27 = vpop.eup %754  ;;  %v341_v28 = vsel %vm320_vm0, %v753_v23, 0.0  ;;  %v400_v40 = vadd.f32 %v396_v37, %v319_v26  ;;  %402 = vst [vmem:[%s1121_s23 + $0x2] sm:$0x3] %v398_v35  ;;  %p839_p6 = pneg %p838_p5 }
  0x41   : > { %v757_v31 = vpop.eup %756  ;;  %v342_v32 = vadd.f32 %v341_v28, %v340_v24  ;;  %v343_v33 = vsel %vm320_vm0, %v755_v27, 0.0  ;;  %403 = vst [vmem:[%s1121_s23 + $0x4] sm:$0x3] %v399_v39 }
  0x42   : > { %v345_v38 = vsel %vm320_vm0, %v757_v31, 0.0  ;;  %404 = vst [vmem:[%s1121_s23 + $0x6] sm:$0x3] %v400_v40  ;;  %p844_p13 = pnand %p843_p10, %p839_p6 }
  0x43   : > { %v344_v41 = vadd.f32 %v343_v33, %v342_v32 }
  0x45   : > { %v346_v42 = vadd.f32 %v345_v38, %v344_v41 }
  0x47   : > { %758 = vrcp.f32 %v346_v42  ;;  %v358_v45 = vand.u32 2147483648, %v346_v42  ;;  %vm352_vm1 = vweird.f32 %v346_v42  ;;  %v356_v47 = vand.u32 2147483647, %v346_v42 }
  0x49   : > { %v359_v49 = vor.u32 1.1754944e-38, %v358_v45  ;;  %vm357_vm4 = vcmp.eq.f32.partialorder %v356_v47, 8.507059e+37 }
  0x4d   : > { %v759_v43 = vpop.eup %758 }
  0x4e   : > { %v348_v44 = vmul.f32 %v759_v43, %v346_v42  ;;  %vm353_vm2 = vweird.f32 %v759_v43 }
  0x4f   : > { %vm354_vm3 = vmor %vm352_vm1, %vm353_vm2 }
  0x50   : > { %v349_v46 = vsub.f32 1.0, %v348_v44 }
  0x52   : > { %v350_v48 = vmul.f32 %v759_v43, %v349_v46 }
  0x54   : > { %v351_v50 = vadd.f32 %v759_v43, %v350_v48 }
  0x56   : > { %v355_v51 = vsel %vm354_vm3, %v759_v43, %v351_v50 }
  0x57   : > { %v360_v53 = vsel %vm357_vm4, %v359_v49, %v355_v51 }
  0x58   : > { %v361_v57 = vmul.f32 %v751_v20, %v360_v53  ;;  %v362_v58 = vmul.f32 %v753_v23, %v360_v53  ;;  %v363_v59 = vmul.f32 %v755_v27, %v360_v53  ;;  %v364_v60 = vmul.f32 %v757_v31, %v360_v53 }
  0x5a   : > { %v385_v61 = vadd.f32 %v381_v52, %v361_v57  ;;  %v386_v62 = vadd.f32 %v382_v54, %v362_v58  ;;  %v387_v63 = vadd.f32 %v383_v55, %v363_v59  ;;  %v388_v0 = vadd.f32 %v384_v56, %v364_v60 }
  0x5b   : > { %v369_v3 = vmul.f32 %v361_v57, %v316_v21  ;;  %v370_v4 = vmul.f32 %v362_v58, %v317_v22  ;;  %v371_v6 = vmul.f32 %v363_v59, %v318_v25  ;;  %v372_v7 = vmul.f32 %v364_v60, %v319_v26 }
  0x5c   : > { %389 = vst [vmem:[%s1109_s0] sm:$0x3] %v385_v61 }
  0x5d   : > { %390 = vst [vmem:[%s1109_s0 + $0x2] sm:$0x3] %v386_v62  ;;  %v373_v9 = vadd.f32 %v369_v3, %v365_v1  ;;  %v374_v10 = vadd.f32 %v370_v4, %v366_v2  ;;  %v375_v11 = vadd.f32 %v371_v6, %v367_v5  ;;  %v376_v12 = vadd.f32 %v372_v7, %v368_v8 }
  0x5e   : > { %391 = vst [vmem:[%s1109_s0 + $0x4] sm:$0x3] %v387_v63 }
  0x5f   : > { %392 = vst [vmem:[%s1109_s0 + $0x6] sm:$0x3] %v388_v0  ;;  %s1199_s0 = scalar_lea.sflag [#allocation9], %s410_s27 }
  0x60   : > { %377 = vst [vmem:[%s1115_s22] sm:$0x3] %v373_v9 }
  0x61   : > { %378 = vst [vmem:[%s1115_s22 + $0x2] sm:$0x3] %v374_v10 }
  0x62   : > { %379 = vst [vmem:[%s1115_s22 + $0x4] sm:$0x3] %v375_v11 }
  0x63   : > { %380 = vst [vmem:[%s1115_s22 + $0x6] sm:$0x3] %v376_v12 }
  0x64   : > { %847 = shalt.err (!%p844_p13)
}
  0x65   : > { %s971_s21 = smov 32   ;;  %s972_s22 = smov 2  }
  0x66   : > { %673 = dma.vmem_to_hbm [thread:$0]  (%p1053_p9), %s1175_s8, 128, %s448_s24, %s1199_s0, %s971_s21, %s971_s21, %s972_s22  }
  0x67   : > { %s406_s27 = scalar_lea.sflag [#allocation4], %s1094_s19  ;;  %s862_s12 = sshra.s32 %s431_s6, 4  ;;  %s863_s12 = int_to_ptr.hbm [resolvable:$true] %s862_s12 }
  0x68   : > { %s864_s13 = scalar_lea.hbm %s863_s12, 8  ;;  %s868_s23 = scalar_lea.hbm %s1281_s2, 16 }
  0x69   : > { %p865_p0 = scmp.ne.s32.totalorder %s863_s12, %s864_s13  ;;  %p869_p3 = scmp.lt.s32.totalorder %s863_s12, %s1281_s2 }
  0x6a   : > { %p870_p4 = scmp.lt.s32.totalorder %s868_s23, %s864_s13 }
  0x6b   : > { %p866_p1 = pnand %p865_p0, %p1053_p9 }
  0x6c   : > { %p871_p5 = por %p870_p4, %p869_p3 }
  0x6d   : > { %p867_p2 = pneg %p866_p1 }
  0x6f   : > { %p872_p6 = pnand %p871_p5, %p867_p2 }
  0x71   : > { %875 = shalt.err (!%p872_p6)
}
  0x72   : > { %672 = dma.vmem_to_hbm [thread:$0]  (%p1053_p9), %s1190_s5, 128, %s431_s6, %s406_s27, %s971_s21, %s971_s21, %s972_s22  }
  0x73   : > { %s890_s19 = sshra.s32 %s465_s14, 4  ;;  %s896_s25 = scalar_lea.hbm %s1283_s4, 16  ;;  %s891_s19 = int_to_ptr.hbm [resolvable:$true] %s890_s19 }
  0x74   : > { %s892_s8 = scalar_lea.hbm %s891_s19, 8  ;;  %p897_p13 = scmp.lt.s32.totalorder %s891_s19, %s1283_s4 }
  0x75   : > { %p893_p7 = scmp.ne.s32.totalorder %s891_s19, %s892_s8  ;;  %p898_p0 = scmp.lt.s32.totalorder %s896_s25, %s892_s8 }
  0x77   : > { %p894_p8 = pnand %p893_p7, %p1053_p9  ;;  %p899_p1 = por %p898_p0, %p897_p13 }
  0x79   : > { %p895_p10 = pneg %p894_p8 }
  0x7b   : > { %p900_p2 = pnand %p899_p1, %p895_p10 }
  0x7d   : > { %903 = shalt.err (!%p900_p2)
}
  0x7e   : > { %674 = dma.vmem_to_hbm [thread:$0]  (%p1053_p9), %s1194_s7, 128, %s465_s14, %s1199_s0, %s971_s21, %s971_s21, %s972_s22  }
  0x7f PF: > { %s479_s5 = sand.u32 1, %s946_s15   ;;  %p686_p3 = pnand %p639_p12, %p1062_p11 }
  0x80   : > { %s480_s6 = scalar_lea.sflag [#allocation4], %s479_s5 }
  0x81   : > { %p687_p4 = pneg %p686_p3 }
  0x83   : > { %937 = dma.done.wait (%p687_p4), %s480_s6, 128  }
  0x84   : > { %939 = vsyncadd (%p687_p4), %s480_s6, 4294967168  ;;  %s1296_s28 = sadd.s32 4294967294, %s966_s20  }
  0x85   : > { %s489_s27 = sand.u32 1, %s1296_s28  }
  0x86   : > { %s490_s18 = scalar_lea.sflag [#allocation9], %s489_s27 }
  0x87   : > { %941 = dma.done.wait (%p687_p4), %s490_s18, 256  }
  0x88   : > { %943 = vsyncadd (%p687_p4), %s490_s18, 4294967040  ;;  %s27_s20 = sadd.s32 1, %s966_s20   ;;  %s1297_s18 = sld [smem:[#allocation15_spill]] }
  0x89   : > { %p24_p9 = scmp.ge.s32.totalorder %s27_s20, 4   ;;  %s1298_s19 = sld [smem:[#allocation16_spill]] }
  0x8a   : > { %s1299_s15 = smov %s950_s16  ;;  %s1300_s16 = smov %s954_s17 }
  0x8b   : > { %s1301_s17 = smov %s1060_s29  ;;  %26 = sbr.rel (!%p24_p9) target bundleno = 12 (0xc), region = 122 }
  0x90   :  { %506 = vsyncpa [#allocation3], 1 }
  0x91   :  { %508 = vsyncpa [#allocation3 + $0x1], 1 }
  0x92   :  { %509 = vsyncpa [#allocation6], 1 }
  0x93   :  { %511 = vsyncpa [#allocation6 + $0x1], 1 }
  0x94   :  { %512 = vsyncpa [#allocation4], 1 }
  0x95   :  { %514 = vsyncpa [#allocation4 + $0x1], 1 }
  0x96   :  { %515 = vsyncpa [#allocation9], 1 }
  0x97   :  { %517 = vsyncpa [#allocation9 + $0x1], 1 }

</bundles_post_ra>
